<compile_context>
chip_gen: v7x
topology: tpu7x:2x2x1
jax: 0.10.0
libtpu: 0.0.40
codegen_flags: <defaults>
</compile_context>

<pallas_src>
import functools

import jax
import jax.numpy as jnp
from jax.experimental import pallas as pl
from jax.experimental.pallas import tpu as pltpu


def _round_up(x, m):
    return ((x + m - 1) // m) * m


def _fused_actor_critic_kernel(
    x_ref, w1_ref, b1_ref, w2_ref, b2_ref, w3_ref, b3_ref, out_ref, *, action_dim
):
    """One batch tile: 3 fused matmuls + ReLU + masked softmax over action cols."""
    x = x_ref[...]

    h = jnp.dot(x, w1_ref[...], preferred_element_type=jnp.float32) + b1_ref[...]
    h = jnp.maximum(h, 0.0)
    h = jnp.dot(h, w2_ref[...], preferred_element_type=jnp.float32) + b2_ref[...]
    h = jnp.maximum(h, 0.0)
    z = jnp.dot(h, w3_ref[...], preferred_element_type=jnp.float32) + b3_ref[...]
    # z: [TB, 128]; cols 0:A = actor logits, col A = critic value, rest = bias pad (0).

    col = jax.lax.broadcasted_iota(jnp.int32, z.shape, 1)
    is_action = col < action_dim

    # Numerically-stable softmax restricted to the action columns.
    neg_big = jnp.float32(-1e30)
    masked = jnp.where(is_action, z, neg_big)
    m = jnp.max(masked, axis=-1, keepdims=True)
    e = jnp.exp(masked - m)                      # exactly 0 outside action cols
    denom = jnp.sum(e, axis=-1, keepdims=True)
    probs = e / denom                            # exact division -> rows sum to 1

    # Lane-dense output slab: probs in action cols, raw z (value / zeros) elsewhere.
    out_ref[...] = jnp.where(is_action, probs, z).astype(out_ref.dtype)


def actor_critic_forward(state, params, *, block_b=512):
    """Fused ActorCritic forward.

    state:  [B, state_dim] float32
    params: dict from init_params (weights stored as [in, out])
    returns (action_probs [B, action_dim], state_value [B, 1])
    """
    B, state_dim = state.shape
    H = params["aw2"].shape[0]          # 64 per the module spec
    F = 2 * H                           # fused hidden width = 128
    action_dim = params["aw3"].shape[1]
    N_OUT = 128                         # lane-dense output width
    assert action_dim + 1 <= N_OUT, "action_dim too large for one output slab"

    f32 = jnp.float32
    # ---- one-time weight packing (plain JAX, outside the kernel) ----
    W1 = jnp.concatenate([params["aw1"], params["cw1"]], axis=1)          # [S, 128]
    b1 = jnp.concatenate([params["ab1"], params["cb1"]], axis=1)          # [1, 128]
    W2 = (jnp.zeros((F, F), f32)
          .at[:H, :H].set(params["aw2"])
          .at[H:, H:].set(params["cw2"]))                                 # [128, 128]
    b2 = jnp.concatenate([params["ab2"], params["cb2"]], axis=1)          # [1, 128]
    W3 = (jnp.zeros((F, N_OUT), f32)
          .at[:H, :action_dim].set(params["aw3"])
          .at[H:, action_dim:action_dim + 1].set(params["cw3"]))          # [128, 128]
    b3 = (jnp.zeros((1, N_OUT), f32)
          .at[:, :action_dim].set(params["ab3"])
          .at[:, action_dim:action_dim + 1].set(params["cb3"]))           # [1, 128]

    # ---- batch tiling: rows padded to a tile multiple, tile multiple of 8 ----
    tb = min(block_b, _round_up(B, 8))
    B_pad = _round_up(B, tb)
    if B_pad != B:
        state = jnp.pad(state, ((0, B_pad - B), (0, 0)))
    grid = (B_pad // tb,)

    kernel = functools.partial(_fused_actor_critic_kernel, action_dim=action_dim)

    in_specs = [
        pl.BlockSpec((tb, state_dim), lambda i: (i, 0)),   # activations: pipelined
        pl.BlockSpec((state_dim, F), lambda i: (0, 0)),    # weights: VMEM-resident
        pl.BlockSpec((1, F), lambda i: (0, 0)),
        pl.BlockSpec((F, F), lambda i: (0, 0)),
        pl.BlockSpec((1, F), lambda i: (0, 0)),
        pl.BlockSpec((F, N_OUT), lambda i: (0, 0)),
        pl.BlockSpec((1, N_OUT), lambda i: (0, 0)),
    ]
    out_specs = pl.BlockSpec((tb, N_OUT), lambda i: (i, 0))

    out = pl.pallas_call(
        kernel,
        out_shape=jax.ShapeDtypeStruct((B_pad, N_OUT), f32),
        grid=grid,
        in_specs=in_specs,
        out_specs=out_specs,
        compiler_params=pltpu.CompilerParams(
            dimension_semantics=("parallel",),   # shard batch tiles across TCs (v7x)
        ),
    )(state, W1, b1, W2, b2, W3, b3)

    probs = out[:B, :action_dim]
    value = out[:B, action_dim:action_dim + 1]
    return probs, value


def init_params(key, state_dim, action_dim, hidden=64):
    """Deterministic init mimicking torch.nn.Linear default (U(-1/sqrt(fan_in), +))."""
    def linear_init(k, fan_in, fan_out):
        kw, kb = jax.random.split(k)
        bound = 1.0 / jnp.sqrt(jnp.float32(fan_in))
        w = jax.random.uniform(kw, (fan_in, fan_out), jnp.float32, -bound, bound)
        b = jax.random.uniform(kb, (1, fan_out), jnp.float32, -bound, bound)
        return w, b

    keys = jax.random.split(key, 6)
    aw1, ab1 = linear_init(keys[0], state_dim, hidden)
    aw2, ab2 = linear_init(keys[1], hidden, hidden)
    aw3, ab3 = linear_init(keys[2], hidden, action_dim)
    cw1, cb1 = linear_init(keys[3], state_dim, hidden)
    cw2, cb2 = linear_init(keys[4], hidden, hidden)
    cw3, cb3 = linear_init(keys[5], hidden, 1)
    return dict(
        aw1=aw1, ab1=ab1, aw2=aw2, ab2=ab2, aw3=aw3, ab3=ab3,
        cw1=cw1, cb1=cb1, cw2=cw2, cb2=cb2, cw3=cw3, cb3=cb3,
    )


def _reference_forward(state, p):
    """Pure-JAX reference for correctness checking."""
    h = jnp.maximum(state @ p["aw1"] + p["ab1"], 0.0)
    h = jnp.maximum(h @ p["aw2"] + p["ab2"], 0.0)
    logits = h @ p["aw3"] + p["ab3"]
    probs = jax.nn.softmax(logits, axis=-1)
    g = jnp.maximum(state @ p["cw1"] + p["cb1"], 0.0)
    g = jnp.maximum(g @ p["cw2"] + p["cb2"], 0.0)
    value = g @ p["cw3"] + p["cb3"]
    return probs, value


def _check(state, params, action_dim):
    probs, value = actor_critic_forward(state, params)
    jax.block_until_ready((probs, value))
    ref_probs, ref_value = _reference_forward(state, params)
    B = state.shape[0]
    assert probs.shape == (B, action_dim)
    assert value.shape == (B, 1)
    assert jnp.allclose(probs, ref_probs, atol=1e-4, rtol=1e-4)
    assert jnp.allclose(jnp.sum(probs, axis=-1), 1.0, atol=1e-4)
    assert jnp.allclose(value, ref_value, atol=1e-4, rtol=1e-4)


if __name__ == "__main__":
    key = jax.random.PRNGKey(0)
    k_params, k_state1, k_state2 = jax.random.split(key, 3)

    B, STATE_DIM, ACTION_DIM = 8, 16, 4
    params = init_params(k_params, STATE_DIM, ACTION_DIM)

    # Small "per-step" batch (single grid step).
    state_small = jax.random.normal(k_state1, (B, STATE_DIM), jnp.float32)
    _check(state_small, params, ACTION_DIM)

    # Larger rollout-style batch: exercises the batch grid, weight residency,
    # and the pad-to-tile / slice-back path (1100 is not a tile multiple).
    state_big = jax.random.normal(k_state2, (1100, STATE_DIM), jnp.float32)
    _check(state_big, params, ACTION_DIM)

    # TODO(synk): get_action / evaluate_actions (Categorical sampling, log_prob,
    # entropy) are host/XLA-side utilities built on this forward; not kernelized.

    print("KERNEL_OK")
</pallas_src>

<mosaic_0001>
module attributes {stable_mosaic.version = 11 : i64} {
  func.func @_fused_actor_critic_kernel(%arg0: i32, %arg1: memref<8x16xf32, #tpu.memory_space<vmem>>, %arg2: memref<16x128xf32, #tpu.memory_space<vmem>>, %arg3: memref<1x128xf32, #tpu.memory_space<vmem>>, %arg4: memref<128x128xf32, #tpu.memory_space<vmem>>, %arg5: memref<1x128xf32, #tpu.memory_space<vmem>>, %arg6: memref<128x128xf32, #tpu.memory_space<vmem>>, %arg7: memref<1x128xf32, #tpu.memory_space<vmem>>, %arg8: memref<8x128xf32, #tpu.memory_space<vmem>>) attributes {dimension_semantics = [#tpu.dimension_semantics<parallel>], iteration_bounds = array<i64: 1>, scalar_prefetch = 0 : i64, scratch_operands = 0 : i64, tpu.core_type = #tpu.core_type<tc>, window_params = [{transform_indices = @transform_0, window_bounds = array<i64: 8, 16>}, {pipeline_mode = #tpu.pipeline_mode<synchronous>, transform_indices = @transform_1, window_bounds = array<i64: 16, 128>}, {pipeline_mode = #tpu.pipeline_mode<synchronous>, transform_indices = @transform_2, window_bounds = array<i64: 1, 128>}, {pipeline_mode = #tpu.pipeline_mode<synchronous>, transform_indices = @transform_3, window_bounds = array<i64: 128, 128>}, {pipeline_mode = #tpu.pipeline_mode<synchronous>, transform_indices = @transform_4, window_bounds = array<i64: 1, 128>}, {pipeline_mode = #tpu.pipeline_mode<synchronous>, transform_indices = @transform_5, window_bounds = array<i64: 128, 128>}, {pipeline_mode = #tpu.pipeline_mode<synchronous>, transform_indices = @transform_6, window_bounds = array<i64: 1, 128>}, {transform_indices = @transform_7, window_bounds = array<i64: 8, 128>}]} {
    %c0 = arith.constant 0 : index
    %c0_0 = arith.constant 0 : index
    %0 = vector.load %arg1[%c0, %c0_0] : memref<8x16xf32, #tpu.memory_space<vmem>>, vector<8x16xf32>
    %c0_1 = arith.constant 0 : index
    %c0_2 = arith.constant 0 : index
    %1 = vector.load %arg2[%c0_1, %c0_2] : memref<16x128xf32, #tpu.memory_space<vmem>>, vector<16x128xf32>
    %cst = arith.constant dense<0.000000e+00> : vector<8x128xf32>
    %2 = tpu.matmul %0, %1, %cst {dimension_numbers = #tpu.dot_dimension_numbers<[1], [0], [0], [1], [0, 0, 1, 1], [], []>} : vector<8x16xf32>, vector<16x128xf32>, vector<8x128xf32> -> vector<8x128xf32>
    %c0_3 = arith.constant 0 : index
    %c0_4 = arith.constant 0 : index
    %3 = vector.load %arg3[%c0_3, %c0_4] : memref<1x128xf32, #tpu.memory_space<vmem>>, vector<1x128xf32>
    %4 = vector.broadcast %3 : vector<1x128xf32> to vector<8x128xf32>
    %5 = arith.addf %2, %4 : vector<8x128xf32>
    %cst_5 = arith.constant 0.000000e+00 : f32
    %6 = vector.broadcast %cst_5 : f32 to vector<8x128xf32>
    %7 = arith.maximumf %5, %6 : vector<8x128xf32>
    %c0_6 = arith.constant 0 : index
    %c0_7 = arith.constant 0 : index
    %8 = vector.load %arg4[%c0_6, %c0_7] : memref<128x128xf32, #tpu.memory_space<vmem>>, vector<128x128xf32>
    %cst_8 = arith.constant dense<0.000000e+00> : vector<8x128xf32>
    %9 = tpu.matmul %7, %8, %cst_8 {dimension_numbers = #tpu.dot_dimension_numbers<[1], [0], [0], [1], [0, 0, 1, 1], [], []>} : vector<8x128xf32>, vector<128x128xf32>, vector<8x128xf32> -> vector<8x128xf32>
    %c0_9 = arith.constant 0 : index
    %c0_10 = arith.constant 0 : index
    %10 = vector.load %arg5[%c0_9, %c0_10] : memref<1x128xf32, #tpu.memory_space<vmem>>, vector<1x128xf32>
    %11 = vector.broadcast %10 : vector<1x128xf32> to vector<8x128xf32>
    %12 = arith.addf %9, %11 : vector<8x128xf32>
    %cst_11 = arith.constant 0.000000e+00 : f32
    %13 = vector.broadcast %cst_11 : f32 to vector<8x128xf32>
    %14 = arith.maximumf %12, %13 : vector<8x128xf32>
    %c0_12 = arith.constant 0 : index
    %c0_13 = arith.constant 0 : index
    %15 = vector.load %arg6[%c0_12, %c0_13] : memref<128x128xf32, #tpu.memory_space<vmem>>, vector<128x128xf32>
    %cst_14 = arith.constant dense<0.000000e+00> : vector<8x128xf32>
    %16 = tpu.matmul %14, %15, %cst_14 {dimension_numbers = #tpu.dot_dimension_numbers<[1], [0], [0], [1], [0, 0, 1, 1], [], []>} : vector<8x128xf32>, vector<128x128xf32>, vector<8x128xf32> -> vector<8x128xf32>
    %c0_15 = arith.constant 0 : index
    %c0_16 = arith.constant 0 : index
    %17 = vector.load %arg7[%c0_15, %c0_16] : memref<1x128xf32, #tpu.memory_space<vmem>>, vector<1x128xf32>
    %18 = vector.broadcast %17 : vector<1x128xf32> to vector<8x128xf32>
    %19 = arith.addf %16, %18 : vector<8x128xf32>
    %20 = tpu.iota {dimensions = array<i32: 1>} : vector<8x128xi32>
    %c4_i32 = arith.constant 4 : i32
    %21 = vector.broadcast %c4_i32 : i32 to vector<8x128xi32>
    %22 = arith.cmpi slt, %20, %21 : vector<8x128xi32>
    %cst_17 = arith.constant -1.000000e+30 : f32
    %23 = vector.broadcast %cst_17 : f32 to vector<8x128xf32>
    %24 = arith.select %22, %19, %23 : vector<8x128xi1>, vector<8x128xf32>
    %cst_18 = arith.constant dense<0xFF800000> : vector<8xf32>
    %25 = vector.multi_reduction <maximumf>, %24, %cst_18 [1] : vector<8x128xf32> to vector<8xf32>
    %26 = vector.shape_cast %25 : vector<8xf32> to vector<8x1xf32>
    %27 = vector.broadcast %26 : vector<8x1xf32> to vector<8x128xf32>
    %28 = arith.subf %24, %27 : vector<8x128xf32>
    %29 = math.exp %28 : vector<8x128xf32>
    %cst_19 = arith.constant dense<0.000000e+00> : vector<8xf32>
    %30 = vector.multi_reduction <add>, %29, %cst_19 [1] : vector<8x128xf32> to vector<8xf32>
    %31 = vector.shape_cast %30 : vector<8xf32> to vector<8x1xf32>
    %32 = vector.broadcast %31 : vector<8x1xf32> to vector<8x128xf32>
    %33 = arith.divf %29, %32 : vector<8x128xf32>
    %34 = arith.select %22, %33, %19 : vector<8x128xi1>, vector<8x128xf32>
    %c0_20 = arith.constant 0 : index
    %c0_21 = arith.constant 0 : index
    %35 = vector.load %arg8[%c0_20, %c0_21] : memref<8x128xf32, #tpu.memory_space<vmem>>, vector<8x128xf32>
    tpu.vector_store %arg8[%c0_20, %c0_21], %34 {strides = array<i32>} : memref<8x128xf32, #tpu.memory_space<vmem>>, vector<8x128xf32>,
    return
  }
  func.func @transform_0(%arg0: i32) -> (i32, i32) {
    %c0_i32 = arith.constant 0 : i32
    %c0_i32_0 = arith.constant 0 : i32
    return %arg0, %c0_i32 : i32, i32
  }
  func.func @transform_1(%arg0: i32) -> (i32, i32) {
    %c0_i32 = arith.constant 0 : i32
    %c0_i32_0 = arith.constant 0 : i32
    %c0_i32_1 = arith.constant 0 : i32
    return %c0_i32, %c0_i32_0 : i32, i32
  }
  func.func @transform_2(%arg0: i32) -> (i32, i32) {
    %c0_i32 = arith.constant 0 : i32
    %c0_i32_0 = arith.constant 0 : i32
    %c0_i32_1 = arith.constant 0 : i32
    return %c0_i32, %c0_i32_0 : i32, i32
  }
  func.func @transform_3(%arg0: i32) -> (i32, i32) {
    %c0_i32 = arith.constant 0 : i32
    %c0_i32_0 = arith.constant 0 : i32
    %c0_i32_1 = arith.constant 0 : i32
    return %c0_i32, %c0_i32_0 : i32, i32
  }
  func.func @transform_4(%arg0: i32) -> (i32, i32) {
    %c0_i32 = arith.constant 0 : i32
    %c0_i32_0 = arith.constant 0 : i32
    %c0_i32_1 = arith.constant 0 : i32
    return %c0_i32, %c0_i32_0 : i32, i32
  }
  func.func @transform_5(%arg0: i32) -> (i32, i32) {
    %c0_i32 = arith.constant 0 : i32
    %c0_i32_0 = arith.constant 0 : i32
    %c0_i32_1 = arith.constant 0 : i32
    return %c0_i32, %c0_i32_0 : i32, i32
  }
  func.func @transform_6(%arg0: i32) -> (i32, i32) {
    %c0_i32 = arith.constant 0 : i32
    %c0_i32_0 = arith.constant 0 : i32
    %c0_i32_1 = arith.constant 0 : i32
    return %c0_i32, %c0_i32_0 : i32, i32
  }
  func.func @transform_7(%arg0: i32) -> (i32, i32) {
    %c0_i32 = arith.constant 0 : i32
    %c0_i32_0 = arith.constant 0 : i32
    return %arg0, %c0_i32 : i32, i32
  }
}

</mosaic_0001>

<bundles_post_ra>
// kernel: tpu_custom_call.1
= control target key start
LH: loop header
LB: loop body
LE: loop exit
PB: predicated region body
PF: predicated region fallthrough
CT: control target
= control target key end

     0   :  { %12 = vsyncpa [#allocation3], 0  ;;  %s835_s0 = inlined_call_operand.hbm [shape: f32[8,16], index: 0, kind: input, shape index: {}]   ;;  %s836_s1 = inlined_call_operand.hbm [shape: f32[16,128], index: 1, kind: input, shape index: {}]   ;;  %s837_s2 = inlined_call_operand.vmem [shape: f32[1,128], index: 2, kind: input, shape index: {}]   ;;  %s838_s3 = inlined_call_operand.hbm [shape: f32[128,128], index: 3, kind: input, shape index: {}]   ;;  %s839_s4 = inlined_call_operand.vmem [shape: f32[1,128], index: 4, kind: input, shape index: {}]   ;;  %s840_s5 = inlined_call_operand.hbm [shape: f32[128,128], index: 5, kind: input, shape index: {}]   ;;  %s841_s6 = inlined_call_operand.vmem [shape: f32[1,128], index: 6, kind: input, shape index: {}]   ;;  %s842_s7 = inlined_call_operand.hbm [shape: f32[8,128], index: 7, kind: output, shape index: {}]  }
   0x1   :  { %13 = vsyncpa [#allocation6], 0 }
   0x2   :  { %14 = vsyncpa [#allocation9], 0 }
   0x3   :  { %15 = vsyncpa [#allocation4], 0  ;;  %s685_s24 = smov [#allocation5]   ;;  %s567_s28 = scalar_lea.hbm %s836_s1, 256 }
   0x4   :  { %s31_s25 = sshll.u32 %s685_s24, 4  ;;  %p568_p0 = scmp.ne.s32.totalorder %s836_s1, %s567_s28  ;;  %s32_s25 = int_to_ptr.vmem [resolvable:$true] %s31_s25 }
   0x5   :  { %p571_p1 = scmp.lt.u32.totalorder %s567_s28, %s836_s1 }
   0x7   :  { %p573_p2 = pnand %p571_p1, %p568_p0 }
   0x9   :  { %576 = shalt.err (!%p573_p2)
}
   0xa   :  { %s577_s10 = scalar_lea.vmem %s32_s25, 256  ;;  %p582_p4 = scmp.lt.s32.totalorder %s32_s25, %s32_s25 }
   0xb   :  { %p578_p3 = scmp.ne.s32.totalorder %s32_s25, %s577_s10  ;;  %p583_p5 = scmp.lt.s32.totalorder %s577_s10, %s577_s10 }
   0xd   :  { %p584_p6 = por %p583_p5, %p582_p4 }
   0xf   :  { %p585_p7 = pnand %p584_p6, %p578_p3 }
  0x11   :  { %588 = shalt.err (!%p585_p7)
}
  0x12   :  { %s686_s11 = smov 128   ;;  %s687_s12 = smov 8  }
  0x13   :  { %37 = dma.hbm_to_vmem [thread:$0]  %s836_s1, 256, %s32_s25, [#allocation6], %s686_s11, %s686_s11, %s687_s12  }
  0x14   :  { %s688_s15 = smov [#allocation2]   ;;  %s689_s17 = smov [#allocation7]  }
  0x15   :  { %s22_s16 = sshll.u32 %s688_s15, 4  ;;  %s45_s18 = sshll.u32 %s689_s17, 4  ;;  %s23_s16 = int_to_ptr.vmem [resolvable:$true] %s22_s16  ;;  %s46_s18 = int_to_ptr.vmem [resolvable:$true] %s45_s18 }
  0x16   :  { %s589_s21 = scalar_lea.hbm %s835_s0, 128 }
  0x17   :  { %p590_p8 = scmp.ne.s32.totalorder %s835_s0, %s589_s21  ;;  %p593_p9 = scmp.lt.u32.totalorder %s589_s21, %s835_s0 }
  0x19   :  { %p595_p10 = pnand %p593_p9, %p590_p8 }
  0x1b   :  { %598 = shalt.err (!%p595_p10)
}
  0x1c   :  { %s599_s1 = scalar_lea.vmem %s23_s16, 128  ;;  %p604_p12 = scmp.lt.s32.totalorder %s23_s16, %s23_s16 }
  0x1d   :  { %p600_p11 = scmp.ne.s32.totalorder %s23_s16, %s599_s1  ;;  %p605_p13 = scmp.lt.s32.totalorder %s599_s1, %s599_s1 }
  0x1f   :  { %p606_p0 = por %p605_p13, %p604_p12 }
  0x21   :  { %p607_p1 = pnand %p606_p0, %p600_p11 }
  0x23   :  { %610 = shalt.err (!%p607_p1)
}
  0x24   :  { %25 = dma.hbm_to_vmem [thread:$0]  %s835_s0, 128, %s23_s16, [#allocation3]  }
  0x25   :  { %s611_s30 = scalar_lea.hbm %s838_s3, 2048 }
  0x26   :  { %p612_p2 = scmp.ne.s32.totalorder %s838_s3, %s611_s30  ;;  %p615_p3 = scmp.lt.u32.totalorder %s611_s30, %s838_s3 }
  0x28   :  { %p617_p4 = pnand %p615_p3, %p612_p2 }
  0x2a   :  { %620 = shalt.err (!%p617_p4)
}
  0x2b   :  { %s621_s14 = scalar_lea.vmem %s46_s18, 2048  ;;  %p626_p6 = scmp.lt.s32.totalorder %s46_s18, %s46_s18 }
  0x2c   :  { %p622_p5 = scmp.ne.s32.totalorder %s46_s18, %s621_s14  ;;  %p627_p7 = scmp.lt.s32.totalorder %s621_s14, %s621_s14 }
  0x2e   :  { %p628_p8 = por %p627_p7, %p626_p6 }
  0x30   :  { %p629_p9 = pnand %p628_p8, %p622_p5 }
  0x32   :  { %632 = shalt.err (!%p629_p9)
}
  0x33   :  { %51 = dma.hbm_to_vmem [thread:$0]  %s838_s3, 2048, %s46_s18, [#allocation6], %s686_s11, %s686_s11, %s687_s12  }
  0x34   :  { %s690_s16 = smov [#allocation8]   ;;  %s633_s21 = scalar_lea.hbm %s840_s5, 2048 }
  0x35   :  { %s59_s17 = sshll.u32 %s690_s16, 4  ;;  %p634_p10 = scmp.ne.s32.totalorder %s840_s5, %s633_s21  ;;  %s60_s17 = int_to_ptr.vmem [resolvable:$true] %s59_s17 }
  0x36   :  { %p637_p11 = scmp.lt.u32.totalorder %s633_s21, %s840_s5 }
  0x38   :  { %p639_p12 = pnand %p637_p11, %p634_p10 }
  0x3a   :  { %642 = shalt.err (!%p639_p12)
}
  0x3b   :  { %s643_s1 = scalar_lea.vmem %s60_s17, 2048  ;;  %p648_p0 = scmp.lt.s32.totalorder %s60_s17, %s60_s17 }
  0x3c   :  { %p644_p13 = scmp.ne.s32.totalorder %s60_s17, %s643_s1  ;;  %p649_p1 = scmp.lt.s32.totalorder %s643_s1, %s643_s1 }
  0x3e   :  { %p650_p2 = por %p649_p1, %p648_p0 }
  0x40   :  { %p651_p3 = pnand %p650_p2, %p644_p13 }
  0x42   :  { %654 = shalt.err (!%p651_p3)
}
  0x43   :  { %65 = dma.hbm_to_vmem [thread:$0]  %s840_s5, 2048, %s60_s17, [#allocation9], %s686_s11, %s686_s11, %s687_s12  }
  0x44   :  { %677 = dma.done.wait [#allocation3], 128  }
  0x45   :  { %678 = vsyncadd [#allocation3], 4294967168 }
  0x46   :  { %679 = dma.done.wait [#allocation6], 2304  }
  0x47   :  { %680 = vsyncadd [#allocation6], 4294964992 }
  0x48   :  { %681 = dma.done.wait [#allocation9], 2048  }
  0x49   :  { %682 = vsyncadd [#allocation9], 4294965248  ;;  %v691_v0 = vmov 0.0|0.0   ;;  %vm692_vm0 = vmmov 0   ;;  %v693_v1 = vmov 0.0   ;;  %v81_v2 = vld [vmem:[#allocation5] sm:$0xff] }
  0x4a   :  { %502 = vmatprep.subr.bf16.mxu0 %v691_v0  ;;  %429 = vmatprep.mubr.msk.f32.mxu0 %vm692_vm0, %v693_v1  ;;  %v82_v3 = vld [vmem:[#allocation5 + $0x8] sm:$0xff]  ;;  %v165_v5 = vld [vmem:[#allocation7] sm:$0xff]  ;;  %v166_v6 = vld [vmem:[#allocation7 + $0x8] sm:$0xff]  ;;  %vm90_vm1 = vcmask 130048  }
  0x4b   :  { %505 = vmatprep.subr.bf16.mxu1 %v691_v0  ;;  %464 = vmatprep.mubr.msk.f32.mxu1 %vm692_vm0, %v693_v1  ;;  %v503_v4 = vpack.c.bf16 %v82_v3, %v81_v2  ;;  %v167_v7 = vld [vmem:[#allocation7 + $0x10] sm:$0xff]  ;;  %v506_v8 = vpack.c.bf16 %v166_v6, %v165_v5  ;;  %v168_v9 = vld [vmem:[#allocation7 + $0x18] sm:$0xff]  ;;  %v80_v10 = vld [vmem:[#allocation2] sm:$0xff] }
  0x4c   :  { %v509_v11 = vpack.c.bf16 %v168_v9, %v167_v7  ;;  %v169_v12 = vld [vmem:[#allocation7 + $0x20] sm:$0xff]  ;;  %v170_v13 = vld [vmem:[#allocation7 + $0x28] sm:$0xff]  ;;  %v171_v15 = vld [vmem:[#allocation7 + $0x30] sm:$0xff] }
  0x4d   :  { %504 = vmatpush3.bf16.msra.mxu0 %v503_v4  ;;  %507 = vmatpush3.bf16.msra.mxu1 %v506_v8  ;;  %v512_v14 = vpack.c.bf16 %v170_v13, %v169_v12  ;;  %v172_v16 = vld [vmem:[#allocation7 + $0x38] sm:$0xff]  ;;  %v173_v18 = vld [vmem:[#allocation7 + $0x40] sm:$0xff]  ;;  %v174_v19 = vld [vmem:[#allocation7 + $0x48] sm:$0xff] }
  0x4e   :  { %529 = vmatprep.subr.bf16.mxu0 %v691_v0  ;;  %508 = vmatprep.subr.bf16.mxu1 %v691_v0  ;;  %v515_v17 = vpack.c.bf16 %v172_v16, %v171_v15  ;;  %v518_v20 = vpack.c.bf16 %v174_v19, %v173_v18  ;;  %v175_v21 = vld [vmem:[#allocation7 + $0x50] sm:$0xff]  ;;  %v176_v22 = vld [vmem:[#allocation7 + $0x58] sm:$0xff]  ;;  %v177_v24 = vld [vmem:[#allocation7 + $0x60] sm:$0xff] }
  0x4f   :  { %v521_v23 = vpack.c.bf16 %v176_v22, %v175_v21  ;;  %v178_v25 = vld [vmem:[#allocation7 + $0x68] sm:$0xff]  ;;  %v179_v27 = vld [vmem:[#allocation7 + $0x70] sm:$0xff]  ;;  %v180_v28 = vld [vmem:[#allocation7 + $0x78] sm:$0xff] }
  0x50   :  { %430 = vmatmul.mubr.msk.f32.vlgmr.msra.gmra.mrb[0].mxu0 %vm90_vm1, %v80_v10  ;;  %v524_v26 = vpack.c.bf16 %v178_v25, %v177_v24  ;;  %v527_v29 = vpack.c.bf16 %v180_v28, %v179_v27  ;;  %v259_v30 = vld [vmem:[#allocation8] sm:$0xff]  ;;  %v260_v31 = vld [vmem:[#allocation8 + $0x8] sm:$0xff]  ;;  %v261_v32 = vld [vmem:[#allocation8 + $0x10] sm:$0xff] }
  0x51   :  { %499 = vmatprep.mubr.msk.f32.mxu0 %vm692_vm0, %v693_v1  ;;  %510 = vmatpush3.bf16.msra.mxu1 %v509_v11  ;;  %v530_v33 = vpack.c.bf16 %v260_v31, %v259_v30  ;;  %v262_v34 = vld [vmem:[#allocation8 + $0x18] sm:$0xff]  ;;  %v263_v36 = vld [vmem:[#allocation8 + $0x20] sm:$0xff]  ;;  %v264_v37 = vld [vmem:[#allocation8 + $0x28] sm:$0xff] }
  0x52   :  { %511 = vmatprep.subr.bf16.mxu1 %v691_v0  ;;  %v533_v35 = vpack.c.bf16 %v262_v34, %v261_v32  ;;  %v536_v38 = vpack.c.bf16 %v264_v37, %v263_v36  ;;  %v265_v39 = vld [vmem:[#allocation8 + $0x30] sm:$0xff]  ;;  %v266_v40 = vld [vmem:[#allocation8 + $0x38] sm:$0xff]  ;;  %v267_v42 = vld [vmem:[#allocation8 + $0x40] sm:$0xff] }
  0x53   :  { %531 = vmatpush3.bf16.msra.mxu0 %v530_v33  ;;  %v539_v41 = vpack.c.bf16 %v266_v40, %v265_v39  ;;  %v268_v43 = vld [vmem:[#allocation8 + $0x48] sm:$0xff]  ;;  %v269_v45 = vld [vmem:[#allocation8 + $0x50] sm:$0xff]  ;;  %v270_v46 = vld [vmem:[#allocation8 + $0x58] sm:$0xff] }
  0x54   :  { %532 = vmatprep.subr.bf16.mxu0 %v691_v0  ;;  %v542_v44 = vpack.c.bf16 %v268_v43, %v267_v42  ;;  %v545_v47 = vpack.c.bf16 %v270_v46, %v269_v45  ;;  %v271_v48 = vld [vmem:[#allocation8 + $0x60] sm:$0xff]  ;;  %v272_v49 = vld [vmem:[#allocation8 + $0x68] sm:$0xff]  ;;  %v273_v56 = vld [vmem:[#allocation8 + $0x70] sm:$0xff] }
  0x55   :  { %513 = vmatpush3.bf16.msra.mxu1 %v512_v14  ;;  %v548_v50 = vpack.c.bf16 %v272_v49, %v271_v48  ;;  %v384_v51 = vld [vmem:[%s837_s2] ss:$0 sm:$0xff]  ;;  %v274_v57 = vld [vmem:[#allocation8 + $0x78] sm:$0xff] }
  0x56   :  { %514 = vmatprep.subr.bf16.mxu1 %v691_v0  ;;  %v551_v58 = vpack.c.bf16 %v274_v57, %v273_v56  ;;  %v386_v59 = vld [vmem:[%s839_s4] ss:$0 sm:$0xff]  ;;  %s694_s4 = smov [#allocation10]  }
  0x57   :  { %534 = vmatpush3.bf16.msra.mxu0 %v533_v35  ;;  %v387_v2 = vld [vmem:[%s841_s6] ss:$0 sm:$0xff]  ;;  %s373_s28 = sshll.u32 %s694_s4, 4  ;;  %s374_s28 = int_to_ptr.vmem [resolvable:$true] %s373_s28 }
  0x58   :  { %535 = vmatprep.subr.bf16.mxu0 %v691_v0  ;;  %s655_s6 = scalar_lea.vmem %s374_s28, 128  ;;  %p660_p5 = scmp.lt.s32.totalorder %s374_s28, %s374_s28 }
  0x59   :  { %516 = vmatpush3.bf16.msra.mxu1 %v515_v17  ;;  %p656_p4 = scmp.ne.s32.totalorder %s374_s28, %s655_s6  ;;  %p661_p6 = scmp.lt.s32.totalorder %s655_s6, %s655_s6 }
  0x5a   :  { %517 = vmatprep.subr.bf16.mxu1 %v691_v0 }
  0x5b   :  { %537 = vmatpush3.bf16.msra.mxu0 %v536_v38  ;;  %p662_p7 = por %p661_p6, %p660_p5 }
  0x5c   :  { %538 = vmatprep.subr.bf16.mxu0 %v691_v0 }
  0x5d   :  { %519 = vmatpush3.bf16.msra.mxu1 %v518_v20  ;;  %p663_p8 = pnand %p662_p7, %p656_p4 }
  0x5e   :  { %520 = vmatprep.subr.bf16.mxu1 %v691_v0 }
  0x5f   :  { %540 = vmatpush3.bf16.msra.mxu0 %v539_v41 }
  0x60   :  { %541 = vmatprep.subr.bf16.mxu0 %v691_v0 }
  0x61   :  { %522 = vmatpush3.bf16.msra.mxu1 %v521_v23 }
  0x62   :  { %523 = vmatprep.subr.bf16.mxu1 %v691_v0 }
  0x63   :  { %543 = vmatpush3.bf16.msra.mxu0 %v542_v44 }
  0x64   :  { %544 = vmatprep.subr.bf16.mxu0 %v691_v0 }
  0x65   :  { %525 = vmatpush3.bf16.msra.mxu1 %v524_v26 }
  0x66   :  { %526 = vmatprep.subr.bf16.mxu1 %v691_v0 }
  0x67   :  { %546 = vmatpush3.bf16.msra.mxu0 %v545_v47 }
  0x68   :  { %547 = vmatprep.subr.bf16.mxu0 %v691_v0 }
  0x69   :  { %528 = vmatpush3.bf16.msra.mxu1 %v527_v29 }
  0x6b   :  { %549 = vmatpush3.bf16.msra.mxu0 %v548_v50 }
  0x6c   :  { %550 = vmatprep.subr.bf16.mxu0 %v691_v0  ;;  %v352_v0 = vlaneseq }
  0x6e   :  { %v353_v1 = vand.u32 127, %v352_v0 }
  0x6f   :  { %552 = vmatpush3.bf16.msra.mxu0 %v551_v58 }
  0x70   :  { %vm354_vm2 = vcmp.lt.s32.totalorder %v353_v1, 4 }
 0x123   :  { %v160_v52 = vpop.f32.mrb[0].mxu0 }
 0x124   :  { %v161_v53 = vadd.f32 %v384_v51, %v160_v52  ;;  %v431_v54 = vpop.f32.mrb[1].mxu0 }
 0x126   :  { %v164_v55 = vmax.f32 %v161_v53, 0.0 }
 0x128   :  { %465 = vmatmul.mubr.f32.vlgmr.msra.gmra.mrb[0].mxu1 %v164_v55 }
 0x1fb   :  { %v254_v60 = vpop.f32.mrb[0].mxu1 }
 0x1fc   :  { %v255_v61 = vadd.f32 %v386_v59, %v254_v60  ;;  %v466_v62 = vpop.f32.mrb[1].mxu1 }
 0x1fe   :  { %v258_v63 = vmax.f32 %v255_v61, 0.0 }
 0x200   :  { %500 = vmatmul.mubr.f32.vlgmr.msra.gmra.mrb[2].mxu0 %v258_v63 }
 0x2d3   :  { %v348_v3 = vpop.f32.mrb[2].mxu0 }
 0x2d4   :  { %v349_v4 = vadd.f32 %v387_v2, %v348_v3  ;;  %v501_v5 = vpop.f32.mrb[3].mxu0 }
 0x2d6   :  { %v355_v6 = vsel %vm354_vm2, %v349_v4, -1e+30 }
 0x2d7   :  { %356 = vmax.xlane.f32.xlu0 %v355_v6 }
 0x364   :  { %v357_v7 = vpop.xlane.xlu0 %356 }
 0x365   :  { %v358_v8 = vsub.f32 %v355_v6, %v357_v7 }
 0x367   :  { %v359_v9 = vmul.f32 1.442695, %v358_v8 }
 0x369   :  { %563 = vpow2.f32 %v359_v9 }
 0x373   :  { %v564_v10 = vpop.eup %563 }
 0x374   :  { %361 = vadd.xlane.f32.xlu0 %v564_v10 }
 0x401   :  { %v362_v11 = vpop.xlane.xlu0 %361 }
 0x402   :  { %565 = vrcp.f32 %v362_v11 }
 0x40c   :  { %v566_v12 = vpop.eup %565 }
 0x40d   :  { %v364_v13 = vmul.f32 %v566_v12, %v564_v10 }
 0x40f   :  { %v365_v14 = vsel %vm354_vm2, %v364_v13, %v349_v4 }
 0x410   :  { %366 = vst [vmem:[#allocation10] sm:$0xff] %v365_v14 }
 0x411   :  { %666 = shalt.err (!%p663_p8)
}
 0x412   :  { %s667_s8 = scalar_lea.hbm %s842_s7, 128 }
 0x413   :  { %p668_p9 = scmp.ne.s32.totalorder %s842_s7, %s667_s8  ;;  %p671_p10 = scmp.lt.u32.totalorder %s667_s8, %s842_s7 }
 0x415   :  { %p673_p11 = pnand %p671_p10, %p668_p9 }
 0x417   :  { %676 = shalt.err (!%p673_p11)
}
 0x418   :  { %376 = dma.vmem_to_hbm [thread:$0]  %s374_s28, 128, %s842_s7, [#allocation4]  }
 0x419   :  { %683 = dma.done.wait [#allocation4], 128  }
 0x41a   :  { %684 = vsyncadd [#allocation4], 4294967168 }
 0x41b   :  { %380 = vsyncpa [#allocation3], 1 }
 0x41c   :  { %381 = vsyncpa [#allocation6], 1 }
 0x41d   :  { %382 = vsyncpa [#allocation9], 1 }
 0x41e   :  { %383 = vsyncpa [#allocation4], 1 }

</bundles_post_ra>
